<compile_context>
chip_gen: v7x
topology: tpu7x:2x2x1
jax: 0.10.0
libtpu: 0.0.40
codegen_flags: <defaults>
</compile_context>

<pallas_src>
import functools

import jax
import jax.numpy as jnp
from jax import lax
from jax.experimental import pallas as pl
from jax.experimental.pallas import tpu as pltpu


# ---------------------------------------------------------------------------
# Kernels
# ---------------------------------------------------------------------------

def _norm_chunk(xs, gamma_f, beta_f, eps):
    """LayerNorm over channels in the lane-dense (C, chunk) layout."""
    xf = xs.astype(jnp.float32)
    mean = jnp.mean(xf, axis=0, keepdims=True)           # (1, chunk)
    cen = xf - mean
    var = jnp.mean(cen * cen, axis=0, keepdims=True)     # (1, chunk)
    y = cen * lax.rsqrt(var + eps)
    return y * gamma_f + beta_f                          # (C, 1) lane-broadcast


def _patch_embed_kernel_packed(x_ref, g_ref, b_ref, o_ref, xt_ref, *,
                               eps, use_norm, chunk, nchunks, g_fold):
    # x_ref: (1, C, T)   g/b_ref: (C, 1)   o_ref: (1, T//G, G*C)
    # xt_ref: (chunk, C) scratch used for the transpose -> de-interleave step.
    pchunk = chunk // g_fold

    if use_norm:
        gamma_f = g_ref[...].astype(jnp.float32)         # (C, 1), hoisted
        beta_f = b_ref[...].astype(jnp.float32)

    def process(lo, plo):
        xs = x_ref[0, :, pl.ds(lo, chunk)]               # (C, chunk), lane dense
        if use_norm:
            y = _norm_chunk(xs, gamma_f, beta_f, eps).astype(o_ref.dtype)
        else:
            y = xs.astype(o_ref.dtype)                   # no f32 upcast
        xt_ref[...] = y.T                                # (chunk, C) via XLU
        # De-interleave rows g::G and pack side by side along lanes:
        #   packed[n, g*C:(g+1)*C] = transposed[n*G + g, :]
        parts = [xt_ref[pl.ds(g, pchunk, stride=g_fold), :]
                 for g in range(g_fold)]
        o_ref[0, pl.ds(plo, pchunk), :] = jnp.concatenate(parts, axis=-1)

    if nchunks <= 4:
        for j in range(nchunks):                         # short static unroll
            process(j * chunk, j * pchunk)
    else:
        def body(j, carry):
            process(pl.multiple_of(j * chunk, chunk),
                    pl.multiple_of(j * pchunk, pchunk))
            return carry
        lax.fori_loop(0, nchunks, body, 0, unroll=2)


def _patch_embed_kernel_plain(x_ref, g_ref, b_ref, o_ref, *,
                              eps, use_norm, chunk, nchunks):
    # Fallback when C does not divide 128 (or C >= 128): output block (1, T, C).
    if use_norm:
        gamma_f = g_ref[...].astype(jnp.float32)         # (C, 1), hoisted
        beta_f = b_ref[...].astype(jnp.float32)

    def process(lo):
        xs = x_ref[0, :, pl.ds(lo, chunk)]               # (C, chunk)
        if use_norm:
            y = _norm_chunk(xs, gamma_f, beta_f, eps).astype(o_ref.dtype)
        else:
            y = xs.astype(o_ref.dtype)
        o_ref[0, pl.ds(lo, chunk), :] = y.T

    if nchunks <= 4:
        for j in range(nchunks):
            process(j * chunk)
    else:
        def body(j, carry):
            process(pl.multiple_of(j * chunk, chunk))
            return carry
        lax.fori_loop(0, nchunks, body, 0, unroll=2)


# ---------------------------------------------------------------------------
# Tiling helpers
# ---------------------------------------------------------------------------

def _round_down(x, m):
    return (x // m) * m


def _tile_target():
    """Per-generation spatial tile target (bigger where HBM is faster)."""
    try:
        kind = jax.devices()[0].device_kind.lower()
    except Exception:
        return 4096
    if "v7" in kind:
        return 16384
    if "v6" in kind:
        return 8192
    return 4096


def _vmem_tile_cap(c, in_item, out_bytes_per_spatial, budget_bytes=24 << 20):
    """Largest spatial tile whose double-buffered in+out blocks fit the budget."""
    c_pad = -(-c // 8) * 8                               # sublane padding of input block
    per_spatial = 2 * c_pad * in_item + 2 * out_bytes_per_spatial
    return max(128, _round_down(budget_bytes // per_spatial, 128))


def _pick_tile(hw, target, min_blocks):
    """Largest legal spatial tile <= target (multiple of 128, or the full dim)."""
    if hw <= 128:
        return hw                                        # single full-extent block
    cap = target
    if min_blocks > 1:                                   # let megacore split the grid
        cap = min(cap, -(-hw // min_blocks))
    t = max(128, _round_down(min(cap, hw), 128))
    if t >= hw:
        return hw
    return t


# ---------------------------------------------------------------------------
# Wrapper
# ---------------------------------------------------------------------------

def patch_embed_forward(x, gamma=None, beta=None, *, use_norm=True, eps=1e-5,
                        tile=None, pack_lanes=True):
    """PatchEmbed.forward: (B, C, H, W) -> (B, H*W, C), optional LayerNorm over C."""
    B, C, H, W = x.shape
    HW = H * W
    x_flat = x.reshape(B, C, HW)                         # free view

    out_dtype = x.dtype
    if gamma is None:
        gamma = jnp.ones((C,), dtype=x.dtype)
    if beta is None:
        beta = jnp.zeros((C,), dtype=x.dtype)
    gamma2 = gamma.reshape(C, 1)                         # lane-broadcast shape
    beta2 = beta.reshape(C, 1)

    # Lane-dense packing: view (B, HW, C) as (B, HW//G, G*C) with G = 128 // C.
    g_fold = 128 // C if (8 <= C < 128 and 128 % C == 0) else 1
    packed = pack_lanes and g_fold > 1 and HW % g_fold == 0

    in_item = x.dtype.itemsize
    out_item = jnp.dtype(out_dtype).itemsize
    out_bytes_per_spatial = (C if packed else (-(-C // 128) * 128)) * out_item

    target = tile if tile is not None else _tile_target()
    target = min(target, _vmem_tile_cap(C, in_item, out_bytes_per_spatial))
    min_blocks = 2 if B == 1 else 1                      # >=2 grid steps when possible
    t = _pick_tile(HW, target, min_blocks)
    if packed and t % g_fold != 0:                       # safety; never expected
        packed = False

    # In-kernel spatial processing chunk (bounds live vregs inside the big tile).
    if t % 128 == 0:
        chunk = min(t, 512)
        while t % chunk != 0:
            chunk -= 128
    else:
        chunk = t
    nchunks = t // chunk

    n_s = pl.cdiv(HW, t)
    grid = (B, n_s)

    in_specs = [
        # If profiling shows exposed input DMA, add pipeline_mode=pl.Buffered(3).
        pl.BlockSpec((1, C, t), lambda b, s: (b, 0, s)),
        pl.BlockSpec((C, 1), lambda b, s: (0, 0)),
        pl.BlockSpec((C, 1), lambda b, s: (0, 0)),
    ]
    common = dict(eps=eps, use_norm=use_norm, chunk=chunk, nchunks=nchunks)

    if packed:
        hwg = HW // g_fold
        kernel = functools.partial(_patch_embed_kernel_packed,
                                   g_fold=g_fold, **common)
        out_shape = jax.ShapeDtypeStruct((B, hwg, g_fold * C), out_dtype)
        out_specs = pl.BlockSpec((1, t // g_fold, g_fold * C),
                                 lambda b, s: (b, s, 0))
        scratch_shapes = [pltpu.VMEM((chunk, C), out_dtype)]
    else:
        kernel = functools.partial(_patch_embed_kernel_plain, **common)
        out_shape = jax.ShapeDtypeStruct((B, HW, C), out_dtype)
        out_specs = pl.BlockSpec((1, t, C), lambda b, s: (b, s, 0))
        scratch_shapes = []

    out = pl.pallas_call(
        kernel,
        out_shape=out_shape,
        grid_spec=pltpu.PrefetchScalarGridSpec(
            num_scalar_prefetch=0,
            grid=grid,
            in_specs=in_specs,
            out_specs=out_specs,
            scratch_shapes=scratch_shapes,
        ),
        compiler_params=pltpu.CompilerParams(
            dimension_semantics=("parallel", "parallel"),
            vmem_limit_bytes=32 * 1024 * 1024,
        ),
    )(x_flat, gamma2, beta2)

    if packed:
        out = out.reshape(B, HW, C)                      # pure view of the same buffer
    return out


# ---------------------------------------------------------------------------
# Reference + demo
# ---------------------------------------------------------------------------

def _reference(x, gamma, beta, *, use_norm=True, eps=1e-5):
    B, C, H, W = x.shape
    y = jnp.transpose(x.reshape(B, C, H * W), (0, 2, 1)).astype(jnp.float32)
    if use_norm:
        mean = jnp.mean(y, axis=-1, keepdims=True)
        var = jnp.mean((y - mean) ** 2, axis=-1, keepdims=True)
        y = (y - mean) * lax.rsqrt(var + eps)
        y = y * gamma.astype(jnp.float32) + beta.astype(jnp.float32)
    return y.astype(x.dtype)


if __name__ == "__main__":
    key = jax.random.PRNGKey(0)
    kx, kg, kb, kx2, kx3, kg2, kb2 = jax.random.split(key, 7)

    # 1) Packed lane-dense path (C=32 -> G=4) with LayerNorm.
    B, C, H, W = 2, 32, 16, 16
    x = jax.random.normal(kx, (B, C, H, W), dtype=jnp.float32)
    gamma = 1.0 + 0.1 * jax.random.normal(kg, (C,), dtype=jnp.float32)
    beta = 0.1 * jax.random.normal(kb, (C,), dtype=jnp.float32)

    out = jax.block_until_ready(patch_embed_forward(x, gamma, beta, use_norm=True))
    ref = _reference(x, gamma, beta, use_norm=True)
    assert out.shape == (B, H * W, C), out.shape
    assert jnp.allclose(out, ref, atol=1e-5, rtol=1e-5), float(
        jnp.max(jnp.abs(out - ref)))

    # 2) Packed path, norm_layer=None (pure flatten + transpose, input dtype).
    out2 = jax.block_until_ready(patch_embed_forward(x, use_norm=False))
    ref2 = _reference(x, gamma, beta, use_norm=False)
    assert jnp.allclose(out2, ref2, atol=1e-6, rtol=1e-6)

    # 3) Larger spatial extent with explicit tile -> fori_loop chunk path,
    #    grid = (2, 1) so megacore still has >=2 steps.
    x3 = jax.random.normal(kx2, (2, C, 64, 64), dtype=jnp.float32)
    out3 = jax.block_until_ready(
        patch_embed_forward(x3, gamma, beta, use_norm=True, tile=4096))
    ref3 = _reference(x3, gamma, beta, use_norm=True)
    assert out3.shape == (2, 4096, C), out3.shape
    assert jnp.allclose(out3, ref3, atol=1e-5, rtol=1e-5), float(
        jnp.max(jnp.abs(out3 - ref3)))

    # 4) Uneven spatial size (HW=144 not a multiple of the tile): the edge
    #    block is padded in and masked on writeback.
    x4 = jax.random.normal(kx2, (1, C, 12, 12), dtype=jnp.float32)
    out4 = jax.block_until_ready(
        patch_embed_forward(x4, gamma, beta, use_norm=True, tile=128))
    ref4 = _reference(x4, gamma, beta, use_norm=True)
    assert out4.shape == (1, 144, C), out4.shape
    assert jnp.allclose(out4, ref4, atol=1e-5, rtol=1e-5), float(
        jnp.max(jnp.abs(out4 - ref4)))

    # 5) Fallback (non-packed) path: embed_dim=96 does not divide 128.
    C5 = 96
    x5 = jax.random.normal(kx3, (2, C5, 8, 8), dtype=jnp.float32)
    gamma5 = 1.0 + 0.1 * jax.random.normal(kg2, (C5,), dtype=jnp.float32)
    beta5 = 0.1 * jax.random.normal(kb2, (C5,), dtype=jnp.float32)
    out5 = jax.block_until_ready(
        patch_embed_forward(x5, gamma5, beta5, use_norm=True))
    ref5 = _reference(x5, gamma5, beta5, use_norm=True)
    assert out5.shape == (2, 64, C5), out5.shape
    assert jnp.allclose(out5, ref5, atol=1e-5, rtol=1e-5), float(
        jnp.max(jnp.abs(out5 - ref5)))

    print("KERNEL_OK")
</pallas_src>

<mosaic_0001>
module attributes {stable_mosaic.version = 11 : i64} {
  func.func @_patch_embed_kernel_packed(%arg0: i32, %arg1: i32, %arg2: memref<1x32x256xf32, #tpu.memory_space<vmem>>, %arg3: memref<32x1xf32, #tpu.memory_space<vmem>>, %arg4: memref<32x1xf32, #tpu.memory_space<vmem>>, %arg5: memref<1x64x128xf32, #tpu.memory_space<vmem>>, %arg6: memref<256x32xf32, #tpu.memory_space<vmem>>) attributes {dimension_semantics = [#tpu.dimension_semantics<parallel>, #tpu.dimension_semantics<parallel>], iteration_bounds = array<i64: 2, 1>, scalar_prefetch = 0 : i64, scratch_operands = 1 : i64, tpu.core_type = #tpu.core_type<tc>, window_params = [{transform_indices = @transform_0, window_bounds = array<i64: 1, 32, 256>}, {pipeline_mode = #tpu.pipeline_mode<synchronous>, transform_indices = @transform_1, window_bounds = array<i64: 32, 1>}, {pipeline_mode = #tpu.pipeline_mode<synchronous>, transform_indices = @transform_2, window_bounds = array<i64: 32, 1>}, {transform_indices = @transform_3, window_bounds = array<i64: 1, 64, 128>}]} {
    %c0 = arith.constant 0 : index
    %c0_0 = arith.constant 0 : index
    %0 = vector.load %arg3[%c0, %c0_0] : memref<32x1xf32, #tpu.memory_space<vmem>>, vector<32x1xf32>
    %c0_1 = arith.constant 0 : index
    %c0_2 = arith.constant 0 : index
    %1 = vector.load %arg4[%c0_1, %c0_2] : memref<32x1xf32, #tpu.memory_space<vmem>>, vector<32x1xf32>
    %c0_3 = arith.constant 0 : index
    %c0_4 = arith.constant 0 : index
    %c0_5 = arith.constant 0 : index
    %2 = vector.load %arg2[%c0_3, %c0_4, %c0_5] : memref<1x32x256xf32, #tpu.memory_space<vmem>>, vector<1x32x256xf32>
    %3 = vector.shape_cast %2 : vector<1x32x256xf32> to vector<32x256xf32>
    %cst = arith.constant dense<0.000000e+00> : vector<256xf32>
    %4 = vector.multi_reduction <add>, %3, %cst [0] : vector<32x256xf32> to vector<256xf32>
    %5 = vector.shape_cast %4 : vector<256xf32> to vector<1x256xf32>
    %cst_6 = arith.constant 3.200000e+01 : f32
    %6 = vector.broadcast %cst_6 : f32 to vector<1x256xf32>
    %7 = arith.divf %5, %6 : vector<1x256xf32>
    %8 = vector.broadcast %7 : vector<1x256xf32> to vector<32x256xf32>
    %9 = arith.subf %3, %8 : vector<32x256xf32>
    %10 = arith.mulf %9, %9 : vector<32x256xf32>
    %cst_7 = arith.constant dense<0.000000e+00> : vector<256xf32>
    %11 = vector.multi_reduction <add>, %10, %cst_7 [0] : vector<32x256xf32> to vector<256xf32>
    %12 = vector.shape_cast %11 : vector<256xf32> to vector<1x256xf32>
    %cst_8 = arith.constant 3.200000e+01 : f32
    %13 = vector.broadcast %cst_8 : f32 to vector<1x256xf32>
    %14 = arith.divf %12, %13 : vector<1x256xf32>
    %cst_9 = arith.constant 9.99999974E-6 : f32
    %15 = vector.broadcast %cst_9 : f32 to vector<1x256xf32>
    %16 = arith.addf %14, %15 : vector<1x256xf32>
    %17 = math.rsqrt %16 : vector<1x256xf32>
    %18 = vector.broadcast %17 : vector<1x256xf32> to vector<32x256xf32>
    %19 = arith.mulf %9, %18 : vector<32x256xf32>
    %20 = vector.broadcast %0 : vector<32x1xf32> to vector<32x256xf32>
    %21 = arith.mulf %19, %20 : vector<32x256xf32>
    %22 = vector.broadcast %1 : vector<32x1xf32> to vector<32x256xf32>
    %23 = arith.addf %21, %22 : vector<32x256xf32>
    %24 = tpu.transpose %23, [1, 0] : vector<32x256xf32> -> vector<256x32xf32>
    %c0_10 = arith.constant 0 : index
    %c0_11 = arith.constant 0 : index
    %25 = vector.load %arg6[%c0_10, %c0_11] : memref<256x32xf32, #tpu.memory_space<vmem>>, vector<256x32xf32>
    tpu.vector_store %arg6[%c0_10, %c0_11], %24 {strides = array<i32>} : memref<256x32xf32, #tpu.memory_space<vmem>>, vector<256x32xf32>,
    %c0_12 = arith.constant 0 : index
    %c0_13 = arith.constant 0 : index
    %26 = tpu.strided_load %arg6[%c0_12, %c0_13] {strides = array<i32: 4, 1>} : memref<256x32xf32, #tpu.memory_space<vmem>>, vector<64x32xf32>
    %c1 = arith.constant 1 : index
    %c0_14 = arith.constant 0 : index
    %27 = tpu.strided_load %arg6[%c1, %c0_14] {strides = array<i32: 4, 1>} : memref<256x32xf32, #tpu.memory_space<vmem>>, vector<64x32xf32>
    %c2 = arith.constant 2 : index
    %c0_15 = arith.constant 0 : index
    %28 = tpu.strided_load %arg6[%c2, %c0_15] {strides = array<i32: 4, 1>} : memref<256x32xf32, #tpu.memory_space<vmem>>, vector<64x32xf32>
    %c3 = arith.constant 3 : index
    %c0_16 = arith.constant 0 : index
    %29 = tpu.strided_load %arg6[%c3, %c0_16] {strides = array<i32: 4, 1>} : memref<256x32xf32, #tpu.memory_space<vmem>>, vector<64x32xf32>
    %30 = tpu.concatenate %26, %27, %28, %29 in 1 : vector<64x32xf32>, vector<64x32xf32>, vector<64x32xf32>, vector<64x32xf32> -> vector<64x128xf32>
    %c0_17 = arith.constant 0 : index
    %c0_18 = arith.constant 0 : index
    %c0_19 = arith.constant 0 : index
    %31 = vector.load %arg5[%c0_17, %c0_18, %c0_19] : memref<1x64x128xf32, #tpu.memory_space<vmem>>, vector<1x64x128xf32>
    %32 = vector.shape_cast %31 : vector<1x64x128xf32> to vector<64x128xf32>
    %33 = vector.shape_cast %30 : vector<64x128xf32> to vector<1x64x128xf32>
    tpu.vector_store %arg5[%c0_17, %c0_18, %c0_19], %33 {strides = array<i32>} : memref<1x64x128xf32, #tpu.memory_space<vmem>>, vector<1x64x128xf32>,
    return
  }
  func.func @transform_0(%arg0: i32, %arg1: i32) -> (i32, i32, i32) {
    %c0_i32 = arith.constant 0 : i32
    %c0_i32_0 = arith.constant 0 : i32
    return %arg0, %c0_i32, %arg1 : i32, i32, i32
  }
  func.func @transform_1(%arg0: i32, %arg1: i32) -> (i32, i32) {
    %c0_i32 = arith.constant 0 : i32
    %c0_i32_0 = arith.constant 0 : i32
    %c0_i32_1 = arith.constant 0 : i32
    return %c0_i32, %c0_i32_0 : i32, i32
  }
  func.func @transform_2(%arg0: i32, %arg1: i32) -> (i32, i32) {
    %c0_i32 = arith.constant 0 : i32
    %c0_i32_0 = arith.constant 0 : i32
    %c0_i32_1 = arith.constant 0 : i32
    return %c0_i32, %c0_i32_0 : i32, i32
  }
  func.func @transform_3(%arg0: i32, %arg1: i32) -> (i32, i32, i32) {
    %c0_i32 = arith.constant 0 : i32
    %c0_i32_0 = arith.constant 0 : i32
    return %arg0, %arg1, %c0_i32 : i32, i32, i32
  }
}

</mosaic_0001>

<bundles_post_ra>
// kernel: tpu_custom_call.1
= control target key start
LH: loop header
LB: loop body
LE: loop exit
PB: predicated region body
PF: predicated region fallthrough
CT: control target
= control target key end

     0   :  { %8 = vsyncpa [#allocation4], 0  ;;  %s1285_s0 = inlined_call_operand.hbm [shape: f32[2,32,256], index: 0, kind: input, shape index: {}]   ;;  %s1286_s1 = inlined_call_operand.vmem [shape: f32[32,1], index: 1, kind: input, shape index: {}]   ;;  %s1287_s2 = inlined_call_operand.vmem [shape: f32[32,1], index: 2, kind: input, shape index: {}]   ;;  %s1288_s3 = inlined_call_operand.hbm [shape: f32[2,64,128], index: 3, kind: output, shape index: {}]  }
   0x1   :  { %10 = vsyncpa [#allocation4 + $0x1], 0 }
   0x2   :  { %11 = vsyncpa [#allocation5], 0 }
   0x3   :  { %13 = vsyncpa [#allocation5 + $0x1], 0  ;;  %s981_s12 = smov 0   ;;  %s983_s13 = smov 0  }
   0x4   :  { %s985_s14 = smov 0   ;;  %s987_s15 = smov 0  }
   0x5   :  { %s989_s16 = smov 0   ;;  %s991_s17 = smov 0  }
   0x6 LB: > { %s743_s18 = sadd.s32 4294967295, %s949_s17   ;;  %s744_s19 = sadd.s32 4294967294, %s949_s17   ;;  %s949_s17 = sphi %s991_s17, %s19_s17   ;;  %s945_s16 = sphi %s989_s16, %s1303_s16   ;;  %s941_s15 = sphi %s987_s15, %s1302_s15   ;;  %s937_s14 = sphi %s985_s14, %s1301_s14   ;;  %s933_s13 = sphi %s983_s13, %s1300_s13   ;;  %s929_s12 = sphi %s981_s12, %s1299_s12  }
   0x7   : > { %s31_s20 = sadd.s32 1, %s945_s16  ;;  %s40_s21 = sadd.s32 1, %s937_s14 }
   0x8   : > { %p33_p0 = scmp.ge.s32.totalorder %s31_s20, 2  ;;  %p47_p1 = scmp.ne.s32.totalorder %s937_s14, %s933_s13 }
   0x9   : > { %p48_p2 = scmp.eq.s32.totalorder %s949_s17, 0  ;;  %p53_p3 = scmp.ne.s32.totalorder %s933_s13, %s929_s12 }
   0xa   : > { %s1305_s20 = smov (%p33_p0, %s31_s20), 0  ;;  %p54_p5 = scmp.eq.s32.totalorder %s743_s18, 0 }
   0xb   : > { %p1022_p4 = por %p48_p2, %p47_p1  ;;  %s35_s23 = ssub.s32 %s945_s16, %s1305_s20 }
   0xc   : > { %p121_p6 = scmp.eq.s32.totalorder %s743_s18, 1  ;;  %p38_p7 = scmp.eq.s32.totalorder %s35_s23, 0 }
   0xd   : > { %p1028_p8 = por %p54_p5, %p53_p3  ;;  %p127_p10 = scmp.eq.s32.totalorder %s744_s19, 1 }
   0xe   : > { %p1032_p9 = por %p121_p6, %p47_p1  ;;  %p772_p13 = scmp.lt.s32.totalorder %s949_s17, 2 }
   0xf   : > { %s1037_s26 = scalar_select %p38_p7, %s937_s14, %s40_s21  }
  0x10   : > { %s1292_s25 = scalar_select %p1032_p9, 1, 0 }
  0x11   : > { %p1039_p11 = por %p127_p10, %p53_p3  ;;  %s153_s28 = sand.u32 1, %s937_s14  }
  0x12   : > { %s747_s29 = sshll.u32 %s153_s28, 6  ;;  %s758_s30 = sshll.u32 %s945_s16, 10 }
  0x13   : > { %s1293_s27 = scalar_select %p1039_p11, 1, 0 }
  0x14   : > { %s1050_s6 = scalar_lea.hbm %s1285_s0, %s758_s30  ;;  %s157_s7 = scalar_lea.vmem [#allocation3], %s747_s29 }
  0x15   : > { %s166_s8 = sshll.u32 %s157_s7, 4  ;;  %p1056_p0 = pnand %p772_p13, %p1022_p4  ;;  %s1052_s8 = int_to_ptr.vmem [resolvable:$true] %s166_s8 }
  0x16   : > { %s1061_s10 = scalar_lea.sflag [#allocation4], %s153_s28  ;;  %s837_s11 = scalar_lea.hbm %s1050_s6, 1024 }
  0x17   : > { %p838_p2 = scmp.ne.s32.totalorder %s1050_s6, %s837_s11  ;;  %p839_p3 = pneg %p1056_p0 }
  0x18   : > { %s842_s21 = scalar_lea.hbm %s1285_s0, 2048  ;;  %p843_p4 = scmp.lt.u32.totalorder %s1050_s6, %s1285_s0 }
  0x19   : > { %p840_p5 = pnand %p839_p3, %p838_p2  ;;  %p844_p7 = scmp.lt.u32.totalorder %s842_s21, %s837_s11 }
  0x1a   : > { %p846_p13 = scmp.lt.u32.totalorder %s837_s11, %s1050_s6 }
  0x1b   : > { %p841_p6 = pneg %p840_p5  ;;  %p845_p10 = por %p844_p7, %p843_p4 }
  0x1d   : > { %p847_p12 = por %p846_p13, %p845_p10 }
  0x1f   : > { %p848_p1 = pnand %p847_p12, %p841_p6 }
  0x21   : > { %851 = shalt.err (!%p848_p1)
}
  0x22   : > { %s852_s28 = scalar_lea.vmem %s1052_s8, 1024  ;;  %s951_s29 = smov [#allocation3]  }
  0x23   : > { %p853_p2 = scmp.ne.s32.totalorder %s1052_s8, %s852_s28  ;;  %s857_s30 = sshll.u32 %s951_s29, 4  ;;  %s858_s30 = int_to_ptr.vmem [resolvable:$false] %s857_s30 }
  0x24   : > { %s859_s4 = scalar_lea.vmem %s858_s30, 2048  ;;  %p860_p9 = scmp.lt.s32.totalorder %s1052_s8, %s858_s30 }
  0x25   : > { %p855_p5 = pnand %p853_p2, %p839_p3  ;;  %p861_p4 = scmp.lt.s32.totalorder %s859_s4, %s852_s28 }
  0x27   : > { %p856_p11 = pneg %p855_p5  ;;  %p862_p7 = por %p861_p4, %p860_p9 }
  0x29   : > { %p863_p10 = pnand %p862_p7, %p856_p11 }
  0x2b   : > { %866 = shalt.err (!%p863_p10)
}
  0x2c   : > { %s952_s5 = smov 256   ;;  %s953_s7 = smov 16  }
  0x2d   : > { %767 = dma.hbm_to_vmem [thread:$0]  (!%p1056_p0), %s1050_s6, 1024, %s1052_s8, %s1061_s10, %s952_s5, %s952_s5, %s953_s7  }
  0x2e   : > { %p174_p12 = scmp.lt.s32.totalorder %s949_s17, 3  ;;  %p1295_p1 = scmp.ge.s32.totalorder %s949_s17, 1 }
  0x30   : > { %p175_p3 = pnand %p1295_p1, %p174_p12 }
  0x31   : > { %s1093_s11 = sand.u32 (!%p175_p3), 1, %s933_s13  }
  0x32   : > { %178 = sbr.rel (%p175_p3) target bundleno = 542 (0x21e), region = 32  ;;  %s751_s18 = sshll.u32 (!%p175_p3), %s1093_s11, 6 }
  0x33   : > { %s181_s19 = scalar_lea.sflag (!%p175_p3), [#allocation4], %s1093_s11  ;;  %s1099_s21 = scalar_lea.vmem (!%p175_p3), [#allocation3], %s751_s18 }
  0x39   : > { %920 = dma.done.wait (%p1028_p8), %s181_s19, 1024  }
  0x3a   : > { %922 = vsyncadd (%p1028_p8), %s181_s19, 4294966272  ;;  %v954_v0 = vmov 0   ;;  %v213_v1 = vld [vmem:[%s1287_s2] sm:$0xff]  ;;  %v211_v3 = vld [vmem:[%s1286_s1 + $0x10] sm:$0xff]  ;;  %vm414_vm0 = vcmask 261120   ;;  %s956_s9 = smov 64  }
  0x3b   : > { %832 = vset.pattern.permute.xlu1 %v954_v0  ;;  %831 = vset.pattern.permute.xlu0 %v954_v0  ;;  %v209_v2 = vld [vmem:[%s1286_s1] sm:$0xff]  ;;  %v210_v4 = vld [vmem:[%s1286_s1 + $0x8] sm:$0xff]  ;;  %v212_v5 = vld [vmem:[%s1286_s1 + $0x18] sm:$0xff]  ;;  %s957_s10 = smov 96   ;;  %vm614_vm1 = vcmask 523264   ;;  %vm623_vm2 = vcmask 785408  }
  0x3c   : > { %324 = vperm.xlu1 %832, %v213_v1   ;;  %296 = vperm.xlu0 %831, %v209_v2   ;;  %v214_v6 = vld [vmem:[%s1287_s2 + $0x8] sm:$0xff]  ;;  %v216_v7 = vld [vmem:[%s1287_s2 + $0x18] sm:$0xff]  ;;  %v215_v8 = vld [vmem:[%s1287_s2 + $0x10] sm:$0xff]  ;;  %s1198_s22 = scalar_lea.vmem [#allocation6], %s751_s18  ;;  %s759_s23 = sshll.u32 %s941_s15, 10 }
  0x3d   : > { %v217_v9 = vld [vmem:[%s1099_s21] sm:$0xff]  ;;  %v219_v10 = vld [vmem:[%s1099_s21 + $0x10] sm:$0xff]  ;;  %v218_v11 = vld [vmem:[%s1099_s21 + $0x8] sm:$0xff]  ;;  %s656_s18 = sshll.u32 %s1198_s22, 4  ;;  %s1233_s29 = scalar_lea.hbm %s1288_s3, %s759_s23  ;;  %s1226_s18 = int_to_ptr.vmem [resolvable:$true] %s656_s18 }
  0x3e   : > { %v220_v12 = vld [vmem:[%s1099_s21 + $0x18] sm:$0xff]  ;;  %v225_v13 = vadd.f32 %v219_v10, %v217_v9  ;;  %v221_v14 = vld [vmem:[%s1099_s21 + $0x20] sm:$0xff]  ;;  %v222_v16 = vld [vmem:[%s1099_s21 + $0x28] sm:$0xff]  ;;  %s641_s15 = scalar_lea.sflag [#allocation5], %s1093_s11  ;;  %s867_s30 = scalar_lea.vmem %s1226_s18, 1024 }
  0x3f   : > { %v234_v15 = vadd.f32 %v220_v12, %v218_v11  ;;  %v223_v18 = vld [vmem:[%s1099_s21 + $0x30] sm:$0xff]  ;;  %v224_v20 = vld [vmem:[%s1099_s21 + $0x38] sm:$0xff]  ;;  %s955_s21 = smov 32   ;;  %p868_p8 = scmp.ne.s32.totalorder %s1226_s18, %s867_s30 }
  0x40   : > { %306 = vperm.xlu1 %832, %v211_v3   ;;  %301 = vperm.xlu0 %831, %v210_v4   ;;  %v226_v17 = vadd.f32 %v225_v13, %v221_v14  ;;  %p1296_p9 = scmp.ne.s32.totalorder %s1292_s25, 0  ;;  %s958_s4 = smov [#allocation6]  }
  0x41   : > { %v235_v19 = vadd.f32 %v234_v15, %v222_v16  ;;  %s871_s5 = sshll.u32 %s958_s4, 4  ;;  %s872_s5 = int_to_ptr.vmem [resolvable:$false] %s871_s5 }
  0x42   : > { %v227_v21 = vadd.f32 %v226_v17, %v223_v18  ;;  %p869_p11 = pnand %p868_p8, %p1296_p9  ;;  %s873_s7 = scalar_lea.vmem %s872_s5, 2048 }
  0x43   : > { %v236_v22 = vadd.f32 %v235_v19, %v224_v20  ;;  %p874_p6 = scmp.lt.s32.totalorder %s1226_s18, %s872_s5  ;;  %p875_p13 = scmp.lt.s32.totalorder %s873_s7, %s867_s30 }
  0x44   : > { %311 = vperm.xlu1 %832, %v212_v5   ;;  %329 = vperm.xlu0 %831, %v214_v6   ;;  %v228_v23 = vrot.slane %v227_v21, 4  ;;  %p870_p0 = pneg %p869_p11 }
  0x45   : > { %v237_v24 = vrot.slane %v236_v22, 4  ;;  %p876_p2 = por %p875_p13, %p874_p6 }
  0x46   : > { %v229_v25 = vadd.f32 %v228_v23, %v227_v21 }
  0x47   : > { %v238_v26 = vadd.f32 %v237_v24, %v236_v22  ;;  %p877_p5 = pnand %p876_p2, %p870_p0 }
  0x48   : > { %339 = vperm.xlu1 %832, %v216_v7   ;;  %334 = vperm.xlu0 %831, %v215_v8   ;;  %v230_v27 = vrot.slane %v229_v25, 2 }
  0x49   : > { %v239_v28 = vrot.slane %v238_v26, 2 }
  0x4a   : > { %v231_v29 = vadd.f32 %v230_v27, %v229_v25 }
  0x4b   : > { %v240_v30 = vadd.f32 %v239_v28, %v238_v26 }
  0x4c   : > { %v232_v31 = vrot.slane %v231_v29, 1 }
  0x4d   : > { %v241_v32 = vrot.slane %v240_v30, 1 }
  0x4e   : > { %v233_v33 = vadd.f32 %v232_v31, %v231_v29 }
  0x4f   : > { %v242_v34 = vadd.f32 %v241_v32, %v240_v30 }
  0x50   : > { %v244_v35 = vmul.f32 0.03125, %v233_v33 }
  0x51   : > { %v245_v36 = vmul.f32 0.03125, %v242_v34 }
  0x52   : > { %v246_v37 = vsub.f32 %v217_v9, %v244_v35  ;;  %v248_v38 = vsub.f32 %v219_v10, %v244_v35  ;;  %v250_v41 = vsub.f32 %v221_v14, %v244_v35  ;;  %v252_v47 = vsub.f32 %v223_v18, %v244_v35 }
  0x53   : > { %v247_v39 = vsub.f32 %v218_v11, %v245_v36  ;;  %v249_v40 = vsub.f32 %v220_v12, %v245_v36  ;;  %v251_v44 = vsub.f32 %v222_v16, %v245_v36  ;;  %v253_v50 = vsub.f32 %v224_v20, %v245_v36 }
  0x54   : > { %v254_v42 = vmul.f32 %v246_v37, %v246_v37  ;;  %v256_v43 = vmul.f32 %v248_v38, %v248_v38  ;;  %v258_v48 = vmul.f32 %v250_v41, %v250_v41  ;;  %v260_v53 = vmul.f32 %v252_v47, %v252_v47 }
  0x55   : > { %v255_v45 = vmul.f32 %v247_v39, %v247_v39  ;;  %v257_v46 = vmul.f32 %v249_v40, %v249_v40  ;;  %v259_v51 = vmul.f32 %v251_v44, %v251_v44  ;;  %v261_v55 = vmul.f32 %v253_v50, %v253_v50 }
  0x56   : > { %v262_v49 = vadd.f32 %v256_v43, %v254_v42 }
  0x57   : > { %v271_v52 = vadd.f32 %v257_v46, %v255_v45 }
  0x58   : > { %v263_v54 = vadd.f32 %v262_v49, %v258_v48 }
  0x59   : > { %v272_v56 = vadd.f32 %v271_v52, %v259_v51 }
  0x5a   : > { %v264_v57 = vadd.f32 %v263_v54, %v260_v53 }
  0x5b   : > { %v273_v58 = vadd.f32 %v272_v56, %v261_v55 }
  0x5c   : > { %v265_v59 = vrot.slane %v264_v57, 4 }
  0x5d   : > { %v274_v60 = vrot.slane %v273_v58, 4 }
  0x5e   : > { %v266_v61 = vadd.f32 %v265_v59, %v264_v57 }
  0x5f   : > { %v275_v62 = vadd.f32 %v274_v60, %v273_v58 }
  0x60   : > { %v267_v63 = vrot.slane %v266_v61, 2 }
  0x61   : > { %v276_v0 = vrot.slane %v275_v62, 2 }
  0x62   : > { %v268_v1 = vadd.f32 %v267_v63, %v266_v61 }
  0x63   : > { %v277_v2 = vadd.f32 %v276_v0, %v275_v62 }
  0x64   : > { %v269_v3 = vrot.slane %v268_v1, 1 }
  0x65   : > { %v278_v4 = vrot.slane %v277_v2, 1 }
  0x66   : > { %v270_v5 = vadd.f32 %v269_v3, %v268_v1 }
  0x67   : > { %v279_v6 = vadd.f32 %v278_v4, %v277_v2 }
  0x68   : > { %v280_v7 = vmul.f32 0.03125, %v270_v5 }
  0x69   : > { %v281_v8 = vmul.f32 0.03125, %v279_v6 }
  0x6a   : > { %v282_v9 = vadd.f32 1e-05, %v280_v7 }
  0x6b   : > { %v283_v10 = vadd.f32 1e-05, %v281_v8 }
  0x6c   : > { %833 = vrsqrt.f32 %v282_v9 }
  0x6d   : > { %835 = vrsqrt.f32 %v283_v10 }
  0x76   : > { %v834_v11 = vpop.eup %833 }
  0x77   : > { %v836_v12 = vpop.eup %835  ;;  %v286_v13 = vmul.f32 %v834_v11, %v246_v37  ;;  %v288_v21 = vmul.f32 %v834_v11, %v248_v38  ;;  %v290_v25 = vmul.f32 %v834_v11, %v250_v41  ;;  %v292_v33 = vmul.f32 %v834_v11, %v252_v47 }
  0x78   : > { %v287_v14 = vmul.f32 %v836_v12, %v247_v39  ;;  %v289_v22 = vmul.f32 %v836_v12, %v249_v40  ;;  %v291_v26 = vmul.f32 %v836_v12, %v251_v44  ;;  %v293_v36 = vmul.f32 %v836_v12, %v253_v50 }
  0xbb   : > { %v325_v15 = vpop.permute.xlu1 %324  ;;  %v297_v16 = vpop.permute.xlu0 %296 }
  0xbc   : > { %v314_v17 = vmul.f32 %v297_v16, %v286_v13  ;;  %v315_v18 = vmul.f32 %v297_v16, %v287_v14 }
  0xbe   : > { %v342_v19 = vadd.f32 %v325_v15, %v314_v17  ;;  %v343_v20 = vadd.f32 %v325_v15, %v315_v18 }
  0xbf   : > { %v307_v23 = vpop.permute.xlu1 %306  ;;  %v302_v24 = vpop.permute.xlu0 %301 }
  0xc0   : > { %382 = vxpose.xlu1.b32.start [1/4] (short) %v343_v20, 128  ;;  %350 = vxpose.xlu0.b32.start [1/4] (short) %v342_v19, 128  ;;  %v316_v27 = vmul.f32 %v302_v24, %v288_v21  ;;  %v317_v28 = vmul.f32 %v302_v24, %v289_v22  ;;  %v318_v34 = vmul.f32 %v307_v23, %v290_v25 }
  0xc1   : > { %v319_v35 = vmul.f32 %v307_v23, %v291_v26 }
  0xc3   : > { %v312_v29 = vpop.permute.xlu1 %311  ;;  %v330_v30 = vpop.permute.xlu0 %329 }
  0xc4   : > { %v344_v31 = vadd.f32 %v330_v30, %v316_v27  ;;  %v345_v32 = vadd.f32 %v330_v30, %v317_v28  ;;  %v320_v42 = vmul.f32 %v312_v29, %v292_v33  ;;  %v321_v43 = vmul.f32 %v312_v29, %v293_v36 }
  0xc6   : > { %383 = vxpose.xlu1.b32.cont [2/4] (short) %v345_v32, 128  ;;  %351 = vxpose.xlu0.b32.cont [2/4] (short) %v344_v31, 128 }
  0xc7   : > { %v335_v37 = vpop.permute.xlu0 %334  ;;  %v340_v40 = vpop.permute.xlu1 %339 }
  0xc8   : > { %v346_v38 = vadd.f32 %v335_v37, %v318_v34  ;;  %v347_v39 = vadd.f32 %v335_v37, %v319_v35  ;;  %v348_v41 = vadd.f32 %v340_v40, %v320_v42  ;;  %v349_v44 = vadd.f32 %v340_v40, %v321_v43 }
  0xca   : > { %384 = vxpose.xlu1.b32.cont [3/4] (short) %v347_v39, 128  ;;  %352 = vxpose.xlu0.b32.cont [3/4] (short) %v346_v38, 128 }
  0xce   : > { %385 = vxpose.xlu1.b32.end [4/4] (short) %v349_v44, 128  ;;  %353 = vxpose.xlu0.b32.end [4/4] (short) %v348_v41, 128 }
 0x142   : > { %v398_v45 = vpop.trf.xlu1  ;;  %v366_v46 = vpop.trf.xlu0 }
 0x143   : > { %431 = vst.msk [vmem:[#allocation2 + $0x80] sm:$0xff] %vm414_vm0, %v398_v45  ;;  %415 = vst.msk [vmem:[#allocation2] sm:$0xff] %vm414_vm0, %v366_v46 }
 0x146   : > { %v399_v47 = vpop.trf.xlu1  ;;  %v367_v48 = vpop.trf.xlu0 }
 0x147   : > { %432 = vst.msk [vmem:[#allocation2 + $0x88] sm:$0xff] %vm414_vm0, %v399_v47  ;;  %416 = vst.msk [vmem:[#allocation2 + $0x8] sm:$0xff] %vm414_vm0, %v367_v48 }
 0x14a   : > { %v400_v49 = vpop.trf.xlu1  ;;  %v368_v50 = vpop.trf.xlu0 }
 0x14b   : > { %433 = vst.msk [vmem:[#allocation2 + $0x90] sm:$0xff] %vm414_vm0, %v400_v49  ;;  %417 = vst.msk [vmem:[#allocation2 + $0x10] sm:$0xff] %vm414_vm0, %v368_v50 }
 0x14e   : > { %v401_v51 = vpop.trf.xlu1  ;;  %v369_v52 = vpop.trf.xlu0 }
 0x14f   : > { %434 = vst.msk [vmem:[#allocation2 + $0x98] sm:$0xff] %vm414_vm0, %v401_v51  ;;  %418 = vst.msk [vmem:[#allocation2 + $0x18] sm:$0xff] %vm414_vm0, %v369_v52 }
 0x152   : > { %v402_v53 = vpop.trf.xlu1  ;;  %v370_v54 = vpop.trf.xlu0 }
 0x153   : > { %435 = vst.msk [vmem:[#allocation2 + $0xa0] sm:$0xff] %vm414_vm0, %v402_v53  ;;  %419 = vst.msk [vmem:[#allocation2 + $0x20] sm:$0xff] %vm414_vm0, %v370_v54 }
 0x156   : > { %v403_v55 = vpop.trf.xlu1  ;;  %v371_v56 = vpop.trf.xlu0  ;;  %v463_v57 = vld [vmem:[#allocation2 + $0x1] ss:$4 sm:$0xff]  ;;  %v479_v63 = vld [vmem:[#allocation2 + $0x2] ss:$4 sm:$0xff]  ;;  %v495_v5 = vld [vmem:[#allocation2 + $0x3] ss:$4 sm:$0xff] }
 0x157   : > { %436 = vst.msk [vmem:[#allocation2 + $0xa8] sm:$0xff] %vm414_vm0, %v403_v55  ;;  %420 = vst.msk [vmem:[#allocation2 + $0x28] sm:$0xff] %vm414_vm0, %v371_v56  ;;  %518 = vrot.lane.b32.xlu0 %v463_v57, %s955_s21  ;;  %v471_v60 = vld [vmem:[#allocation2 + $0x81] ss:$4 sm:$0xff]  ;;  %v487_v2 = vld [vmem:[#allocation2 + $0x82] ss:$4 sm:$0xff] }
 0x158   : > { %v503_v9 = vld [vmem:[#allocation2 + $0x83] ss:$4 sm:$0xff]  ;;  %v447_v42 = vld [vmem:[#allocation2] ss:$4 sm:$0xff] }
 0x159   : > { %v455_v47 = vld [vmem:[#allocation2 + $0x80] ss:$4 sm:$0xff] }
 0x15a   : > { %v404_v58 = vpop.trf.xlu1  ;;  %v372_v59 = vpop.trf.xlu0 }
 0x15b   : > { %437 = vst.msk [vmem:[#allocation2 + $0xb0] sm:$0xff] %vm414_vm0, %v404_v58  ;;  %421 = vst.msk [vmem:[#allocation2 + $0x30] sm:$0xff] %vm414_vm0, %v372_v59  ;;  %526 = vrot.lane.b32.xlu0 %v471_v60, %s955_s21 }
 0x15e   : > { %v405_v61 = vpop.trf.xlu1  ;;  %v373_v62 = vpop.trf.xlu0 }
 0x15f   : > { %438 = vst.msk [vmem:[#allocation2 + $0xb8] sm:$0xff] %vm414_vm0, %v405_v61  ;;  %422 = vst.msk [vmem:[#allocation2 + $0x38] sm:$0xff] %vm414_vm0, %v373_v62  ;;  %550 = vrot.lane.b32.xlu0 %v479_v63, %s956_s9 }
 0x162   : > { %v406_v0 = vpop.trf.xlu1  ;;  %v374_v1 = vpop.trf.xlu0 }
 0x163   : > { %439 = vst.msk [vmem:[#allocation2 + $0xc0] sm:$0xff] %vm414_vm0, %v406_v0  ;;  %423 = vst.msk [vmem:[#allocation2 + $0x40] sm:$0xff] %vm414_vm0, %v374_v1  ;;  %558 = vrot.lane.b32.xlu0 %v487_v2, %s956_s9 }
 0x166   : > { %v407_v3 = vpop.trf.xlu1  ;;  %v375_v4 = vpop.trf.xlu0  ;;  %v465_v6 = vld [vmem:[#allocation2 + $0x21] ss:$4 sm:$0xff]  ;;  %v481_v13 = vld [vmem:[#allocation2 + $0x22] ss:$4 sm:$0xff]  ;;  %v497_v19 = vld [vmem:[#allocation2 + $0x23] ss:$4 sm:$0xff] }
 0x167   : > { %440 = vst.msk [vmem:[#allocation2 + $0xc8] sm:$0xff] %vm414_vm0, %v407_v3  ;;  %424 = vst.msk [vmem:[#allocation2 + $0x48] sm:$0xff] %vm414_vm0, %v375_v4  ;;  %582 = vrot.lane.b32.xlu0 %v495_v5, %s957_s10  ;;  %520 = vrot.lane.b32.xlu1 %v465_v6, %s955_s21  ;;  %v473_v10 = vld [vmem:[#allocation2 + $0xa1] ss:$4 sm:$0xff]  ;;  %v489_v16 = vld [vmem:[#allocation2 + $0xa2] ss:$4 sm:$0xff] }
 0x168   : > { %v505_v23 = vld [vmem:[#allocation2 + $0xa3] ss:$4 sm:$0xff]  ;;  %v449_v55 = vld [vmem:[#allocation2 + $0x20] ss:$4 sm:$0xff] }
 0x169   : > { %v457_v61 = vld [vmem:[#allocation2 + $0xa0] ss:$4 sm:$0xff] }
 0x16a   : > { %v408_v7 = vpop.trf.xlu1  ;;  %v376_v8 = vpop.trf.xlu0 }
 0x16b   : > { %441 = vst.msk [vmem:[#allocation2 + $0xd0] sm:$0xff] %vm414_vm0, %v408_v7  ;;  %425 = vst.msk [vmem:[#allocation2 + $0x50] sm:$0xff] %vm414_vm0, %v376_v8  ;;  %590 = vrot.lane.b32.xlu0 %v503_v9, %s957_s10  ;;  %528 = vrot.lane.b32.xlu1 %v473_v10, %s955_s21 }
 0x16e   : > { %v409_v11 = vpop.trf.xlu1  ;;  %v377_v12 = vpop.trf.xlu0 }
 0x16f   : > { %442 = vst.msk [vmem:[#allocation2 + $0xd8] sm:$0xff] %vm414_vm0, %v409_v11  ;;  %426 = vst.msk [vmem:[#allocation2 + $0x58] sm:$0xff] %vm414_vm0, %v377_v12  ;;  %552 = vrot.lane.b32.xlu1 %v481_v13, %s956_s9 }
 0x172   : > { %v410_v14 = vpop.trf.xlu1  ;;  %v378_v15 = vpop.trf.xlu0 }
 0x173   : > { %443 = vst.msk [vmem:[#allocation2 + $0xe0] sm:$0xff] %vm414_vm0, %v410_v14  ;;  %427 = vst.msk [vmem:[#allocation2 + $0x60] sm:$0xff] %vm414_vm0, %v378_v15  ;;  %560 = vrot.lane.b32.xlu1 %v489_v16, %s956_s9 }
 0x176   : > { %v411_v17 = vpop.trf.xlu1  ;;  %v379_v18 = vpop.trf.xlu0  ;;  %v467_v20 = vld [vmem:[#allocation2 + $0x41] ss:$4 sm:$0xff]  ;;  %v483_v27 = vld [vmem:[#allocation2 + $0x42] ss:$4 sm:$0xff]  ;;  %v499_v29 = vld [vmem:[#allocation2 + $0x43] ss:$4 sm:$0xff] }
 0x177   : > { %444 = vst.msk [vmem:[#allocation2 + $0xe8] sm:$0xff] %vm414_vm0, %v411_v17  ;;  %428 = vst.msk [vmem:[#allocation2 + $0x68] sm:$0xff] %vm414_vm0, %v379_v18  ;;  %584 = vrot.lane.b32.xlu1 %v497_v19, %s957_s10  ;;  %522 = vrot.lane.b32.xlu0 %v467_v20, %s955_s21  ;;  %v475_v24 = vld [vmem:[#allocation2 + $0xc1] ss:$4 sm:$0xff]  ;;  %v491_v28 = vld [vmem:[#allocation2 + $0xc2] ss:$4 sm:$0xff] }
 0x178   : > { %v507_v31 = vld [vmem:[#allocation2 + $0xc3] ss:$4 sm:$0xff]  ;;  %v451_v5 = vld [vmem:[#allocation2 + $0x40] ss:$4 sm:$0xff] }
 0x179   : > { %v459_v11 = vld [vmem:[#allocation2 + $0xc0] ss:$4 sm:$0xff] }
 0x17a   : > { %v412_v21 = vpop.trf.xlu1  ;;  %v380_v22 = vpop.trf.xlu0 }
 0x17b   : > { %445 = vst.msk [vmem:[#allocation2 + $0xf0] sm:$0xff] %vm414_vm0, %v412_v21  ;;  %429 = vst.msk [vmem:[#allocation2 + $0x70] sm:$0xff] %vm414_vm0, %v380_v22  ;;  %592 = vrot.lane.b32.xlu1 %v505_v23, %s957_s10  ;;  %530 = vrot.lane.b32.xlu0 %v475_v24, %s955_s21 }
 0x17e   : > { %v413_v25 = vpop.trf.xlu1  ;;  %v381_v26 = vpop.trf.xlu0 }
 0x17f   : > { %446 = vst.msk [vmem:[#allocation2 + $0xf8] sm:$0xff] %vm414_vm0, %v413_v25  ;;  %430 = vst.msk [vmem:[#allocation2 + $0x78] sm:$0xff] %vm414_vm0, %v381_v26  ;;  %554 = vrot.lane.b32.xlu0 %v483_v27, %s956_s9 }
 0x183   : > { %562 = vrot.lane.b32.xlu0 %v491_v28, %s956_s9 }
 0x186   : > { %v469_v30 = vld [vmem:[#allocation2 + $0x61] ss:$4 sm:$0xff]  ;;  %v485_v33 = vld [vmem:[#allocation2 + $0x62] ss:$4 sm:$0xff]  ;;  %v501_v35 = vld [vmem:[#allocation2 + $0x63] ss:$4 sm:$0xff] }
 0x187   : > { %586 = vrot.lane.b32.xlu0 %v499_v29, %s957_s10  ;;  %524 = vrot.lane.b32.xlu1 %v469_v30, %s955_s21  ;;  %v477_v32 = vld [vmem:[#allocation2 + $0xe1] ss:$4 sm:$0xff]  ;;  %v493_v34 = vld [vmem:[#allocation2 + $0xe2] ss:$4 sm:$0xff]  ;;  %v509_v36 = vld [vmem:[#allocation2 + $0xe3] ss:$4 sm:$0xff] }
 0x188   : > { %v453_v19 = vld [vmem:[#allocation2 + $0x60] ss:$4 sm:$0xff] }
 0x189   : > { %v461_v24 = vld [vmem:[#allocation2 + $0xe0] ss:$4 sm:$0xff] }
 0x18b   : > { %594 = vrot.lane.b32.xlu0 %v507_v31, %s957_s10  ;;  %532 = vrot.lane.b32.xlu1 %v477_v32, %s955_s21 }
 0x18f   : > { %556 = vrot.lane.b32.xlu1 %v485_v33, %s956_s9 }
 0x193   : > { %564 = vrot.lane.b32.xlu1 %v493_v34, %s956_s9 }
 0x197   : > { %588 = vrot.lane.b32.xlu1 %v501_v35, %s957_s10 }
 0x19b   : > { %596 = vrot.lane.b32.xlu1 %v509_v36, %s957_s10 }
 0x1c9   : > { %v519_v37 = vpop.permute.xlu0 %518 }
 0x1ca   : > { %v606_v43 = vsel %vm414_vm0, %v447_v42, %v519_v37 }
 0x1cd   : > { %v527_v38 = vpop.permute.xlu0 %526 }
 0x1ce   : > { %v610_v48 = vsel %vm414_vm0, %v455_v47, %v527_v38 }
 0x1d1   : > { %v551_v39 = vpop.permute.xlu0 %550 }
 0x1d2   : > { %v615_v41 = vsel %vm614_vm1, %v606_v43, %v551_v39 }
 0x1d5   : > { %v559_v40 = vpop.permute.xlu0 %558 }
 0x1d6   : > { %v619_v49 = vsel %vm614_vm1, %v610_v48, %v559_v40 }
 0x1d9   : > { %v521_v44 = vpop.permute.xlu1 %520  ;;  %v583_v45 = vpop.permute.xlu0 %582 }
 0x1da   : > { %v624_v46 = vsel %vm623_vm2, %v615_v41, %v583_v45  ;;  %v607_v56 = vsel %vm414_vm0, %v449_v55, %v521_v44 }
 0x1db   : > { %632 = vst [vmem:[%s1198_s22] sm:$0xff] %v624_v46 }
 0x1dd   : > { %v529_v50 = vpop.permute.xlu1 %528  ;;  %v591_v51 = vpop.permute.xlu0 %590 }
 0x1de   : > { %v628_v52 = vsel %vm623_vm2, %v619_v49, %v591_v51  ;;  %v611_v62 = vsel %vm414_vm0, %v457_v61, %v529_v50 }
 0x1df   : > { %636 = vst [vmem:[%s1198_s22 + $0x20] sm:$0xff] %v628_v52 }
 0x1e1   : > { %v553_v53 = vpop.permute.xlu1 %552 }
 0x1e2   : > { %v616_v57 = vsel %vm614_vm1, %v607_v56, %v553_v53 }
 0x1e5   : > { %v561_v54 = vpop.permute.xlu1 %560 }
 0x1e6   : > { %v620_v63 = vsel %vm614_vm1, %v611_v62, %v561_v54 }
 0x1e9   : > { %v585_v58 = vpop.permute.xlu1 %584  ;;  %v523_v59 = vpop.permute.xlu0 %522 }
 0x1ea   : > { %v625_v60 = vsel %vm623_vm2, %v616_v57, %v585_v58  ;;  %v608_v6 = vsel %vm414_vm0, %v451_v5, %v523_v59 }
 0x1eb   : > { %633 = vst [vmem:[%s1198_s22 + $0x8] sm:$0xff] %v625_v60 }
 0x1ed   : > { %v593_v0 = vpop.permute.xlu1 %592  ;;  %v531_v1 = vpop.permute.xlu0 %530 }
 0x1ee   : > { %v629_v2 = vsel %vm623_vm2, %v620_v63, %v593_v0  ;;  %v612_v12 = vsel %vm414_vm0, %v459_v11, %v531_v1 }
 0x1ef   : > { %637 = vst [vmem:[%s1198_s22 + $0x28] sm:$0xff] %v629_v2 }
 0x1f1   : > { %v555_v3 = vpop.permute.xlu0 %554 }
 0x1f2   : > { %v617_v7 = vsel %vm614_vm1, %v608_v6, %v555_v3 }
 0x1f5   : > { %v563_v4 = vpop.permute.xlu0 %562 }
 0x1f6   : > { %v621_v13 = vsel %vm614_vm1, %v612_v12, %v563_v4 }
 0x1f9   : > { %v525_v8 = vpop.permute.xlu1 %524  ;;  %v587_v9 = vpop.permute.xlu0 %586 }
 0x1fa   : > { %v626_v10 = vsel %vm623_vm2, %v617_v7, %v587_v9  ;;  %v609_v20 = vsel %vm414_vm0, %v453_v19, %v525_v8 }
 0x1fb   : > { %634 = vst [vmem:[%s1198_s22 + $0x10] sm:$0xff] %v626_v10 }
 0x1fd   : > { %v533_v14 = vpop.permute.xlu1 %532  ;;  %v595_v15 = vpop.permute.xlu0 %594 }
 0x1fe   : > { %v630_v16 = vsel %vm623_vm2, %v621_v13, %v595_v15  ;;  %v613_v25 = vsel %vm414_vm0, %v461_v24, %v533_v14 }
 0x1ff   : > { %638 = vst [vmem:[%s1198_s22 + $0x30] sm:$0xff] %v630_v16 }
 0x201   : > { %v557_v17 = vpop.permute.xlu1 %556 }
 0x202   : > { %v618_v21 = vsel %vm614_vm1, %v609_v20, %v557_v17 }
 0x205   : > { %v565_v18 = vpop.permute.xlu1 %564 }
 0x206   : > { %v622_v26 = vsel %vm614_vm1, %v613_v25, %v565_v18 }
 0x209   : > { %v589_v22 = vpop.permute.xlu1 %588 }
 0x20a   : > { %v627_v23 = vsel %vm623_vm2, %v618_v21, %v589_v22 }
 0x20b   : > { %635 = vst [vmem:[%s1198_s22 + $0x18] sm:$0xff] %v627_v23 }
 0x20d   : > { %v597_v27 = vpop.permute.xlu1 %596 }
 0x20e   : > { %v631_v28 = vsel %vm623_vm2, %v622_v26, %v597_v27 }
 0x20f   : > { %639 = vst [vmem:[%s1198_s22 + $0x38] sm:$0xff] %v631_v28 }
 0x210   : > { %880 = shalt.err (!%p877_p5)
}
 0x211   : > { %s881_s19 = scalar_lea.hbm %s1233_s29, 1024  ;;  %s885_s21 = scalar_lea.hbm %s1288_s3, 2048 }
 0x212   : > { %p882_p4 = scmp.ne.s32.totalorder %s1233_s29, %s881_s19  ;;  %p886_p12 = scmp.lt.u32.totalorder %s1233_s29, %s1288_s3 }
 0x213   : > { %p887_p1 = scmp.lt.u32.totalorder %s885_s21, %s881_s19  ;;  %p889_p8 = scmp.lt.u32.totalorder %s881_s19, %s1233_s29 }
 0x214   : > { %p883_p7 = pnand %p882_p4, %p1296_p9 }
 0x215   : > { %p888_p3 = por %p887_p1, %p886_p12 }
 0x216   : > { %p884_p10 = pneg %p883_p7 }
 0x217   : > { %p890_p11 = por %p889_p8, %p888_p3 }
 0x219   : > { %p891_p0 = pnand %p890_p11, %p884_p10 }
 0x21b   : > { %894 = shalt.err (!%p891_p0)
}
 0x21c   : > { %s959_s22 = smov 128   ;;  %s960_s23 = smov 8  }
 0x21d   : > { %762 = dma.vmem_to_hbm [thread:$0]  (%p1296_p9), %s1226_s18, 1024, %s1233_s29, %s641_s15, %s959_s22, %s959_s22, %s960_s23  }
 0x21e PF: > { %s671_s24 = sand.u32 1, %s929_s12   ;;  %p1297_p6 = scmp.ne.s32.totalorder %s1293_s27, 0 }
 0x21f   : > { %p1298_p13 = scmp.ge.s32.totalorder %s949_s17, 2  ;;  %s672_s28 = scalar_lea.sflag [#allocation5], %s671_s24 }
 0x221   : > { %p769_p2 = pnand %p1298_p13, %p1297_p6 }
 0x223   : > { %924 = dma.done.wait (!%p769_p2), %s672_s28, 1024  }
 0x224   : > { %926 = vsyncadd (!%p769_p2), %s672_s28, 4294966272  ;;  %s19_s17 = sadd.s32 1, %s949_s17   ;;  %s1299_s12 = smov %s933_s13 }
 0x225   : > { %p16_p5 = scmp.ge.s32.totalorder %s19_s17, 4   ;;  %s1300_s13 = smov %s937_s14 }
 0x226   : > { %s1301_s14 = smov %s1037_s26  ;;  %s1302_s15 = smov %s945_s16 }
 0x227   : > { %s1303_s16 = smov %s1305_s20  ;;  %18 = sbr.rel (!%p16_p5) target bundleno = 6 (0x6), region = 108 }
 0x22e   :  { %677 = vsyncpa [#allocation4], 1 }
 0x22f   :  { %679 = vsyncpa [#allocation4 + $0x1], 1 }
 0x230   :  { %680 = vsyncpa [#allocation5], 1 }
 0x231   :  { %682 = vsyncpa [#allocation5 + $0x1], 1 }

</bundles_post_ra>
